<compile_context>
chip_gen: v6e
topology: v6e:2x2x1
jax: 0.10.0
libtpu: 0.0.40
codegen_flags: <defaults>
</compile_context>

<pallas_src>
import functools

import jax
import jax.numpy as jnp
from jax.experimental import pallas as pl
from jax.experimental.pallas import tpu as pltpu

MARGIN = 1.0
LAMBDA_W = 0.5


def _round_up(x, m):
    return ((x + m - 1) // m) * m


def _coref_mrl_kernel(ids_ref, h_ref, tp_ref, tq_ref,
                      w_er_ref, w_cr_ref, attr_ref, rel_ref,
                      out_ref, *, margin, scale, n_valid, d_pad):
    """One grid step: TILE samples.

    * 3 MXU dots: bf16 entity rows @ fused (re|im, lane-padded) projections.
    * 4 small MXU dots: one-hot(ids) @ resident attrib/relation tables
      (the in-kernel embedding gather).
    * f32 VPU complex product on dense, lane-aligned re/im halves.
    * Masked hinge loss reduced to one scalar, broadcast into this block's
      dense (1, 8, 128) partial-sum output (parallel-grid safe).
    """
    i = pl.program_id(0)
    f32 = jnp.float32
    bf16 = jnp.bfloat16
    tile = h_ref.shape[0]
    n_attr = attr_ref.shape[0]
    n_rel = rel_ref.shape[0]

    ids = ids_ref[...]                                            # [tile, 4] i32

    def onehot(col, k):
        lane = jax.lax.broadcasted_iota(jnp.int32, (tile, k), 1)
        return (ids[:, col:col + 1] == lane).astype(bf16)         # [tile, k]

    a_tab = attr_ref[...]                                         # [A, 2Dp] bf16
    r_tab = rel_ref[...]                                          # [R, 2Dp] bf16

    # Fused (re|im) projections — one dot per operand, f32 accumulation.
    e_h = jnp.dot(h_ref[...], w_er_ref[...], preferred_element_type=f32)
    e_h = e_h + jnp.dot(onehot(0, n_attr), a_tab, preferred_element_type=f32)
    e_p = jnp.dot(tp_ref[...], w_cr_ref[...], preferred_element_type=f32)
    e_p = e_p + jnp.dot(onehot(1, n_attr), a_tab, preferred_element_type=f32)
    e_q = jnp.dot(tq_ref[...], w_cr_ref[...], preferred_element_type=f32)
    e_q = e_q + jnp.dot(onehot(2, n_attr), a_tab, preferred_element_type=f32)
    r_e = jnp.dot(onehot(3, n_rel), r_tab, preferred_element_type=f32)

    # Lane-aligned re/im split (d_pad is a multiple of 128 => free slice).
    h_re, h_im = e_h[:, :d_pad], e_h[:, d_pad:]
    r_re, r_im = r_e[:, :d_pad], r_e[:, d_pad:]
    f_re = h_re * r_re - h_im * r_im
    f_im = h_im * r_re + h_re * r_im

    # Re(<h, r, conj(t)>) = sum(Re(h*r)*t_re + Im(h*r)*t_im)
    pos = jnp.sum(e_p[:, :d_pad] * f_re + e_p[:, d_pad:] * f_im,
                  axis=-1, keepdims=True)                          # [tile, 1]
    neg = jnp.sum(e_q[:, :d_pad] * f_re + e_q[:, d_pad:] * f_im,
                  axis=-1, keepdims=True)

    # NaN-safe validity mask for the partial last block (jnp.where, not *).
    row = jax.lax.broadcasted_iota(jnp.int32, (tile, 1), 0) + i * tile
    hinge = jnp.maximum(margin + neg - pos, 0.0)
    hinge = jnp.where(row < n_valid, hinge, 0.0)

    part = jnp.sum(hinge) * scale                                  # scalar
    out_ref[...] = jnp.full((1, 8, 128), part, dtype=f32)          # dense store


def coref_mrl_forward(h_x, triples, offsets, contexts, attributes, params,
                      margin=MARGIN, lambda_w=LAMBDA_W, block_n=512,
                      vmem_budget_bytes=48 * 1024 * 1024):
    """Returns (loss, h_x), mirroring CorefMRL.forward."""
    B, S, H = h_x.shape
    attrib_table = params["attrib_table"]            # [A, H]
    rel_table = params["rel_table"]                  # [R, 2*D]
    w_er, w_cr, w_ar = params["w_er"], params["w_cr"], params["w_ar"]   # [H, 2*D]
    D = rel_table.shape[-1] // 2
    d_pad = _round_up(D, 128)
    bf16 = jnp.bfloat16

    # ---- CorefNegativeSampler (glue: index arithmetic, stays in XLA) -------
    # TODO(synk): the reference sampler corrupts tails randomly; here the
    # negative tail is deterministically taken from the rolled batch contexts.
    head_pos = triples[:, :, 0]                       # [B, T]
    rel_id = triples[:, :, 1]                         # [B, T]
    tail_pos = triples[:, :, 2]                       # [B, T]
    neg_tail_pos = jnp.roll(contexts, shift=1, axis=1)

    flat_heads = (offsets[:, None] + head_pos).reshape(-1)   # batch-flattened
    flat_tails = (offsets[:, None] + tail_pos).reshape(-1)
    flat_negs = (offsets[:, None] + neg_tail_pos).reshape(-1)
    attr_flat = attributes.reshape(-1)

    flat_h = h_x.reshape(B * S, H)
    # TODO(synk): these three row gathers still run as XLA ops that write
    # [N, H] intermediates to HBM; an in-kernel gather via scalar-prefetched
    # row indices + per-row pltpu.make_async_copy would remove that traffic.
    h_rows = flat_h[flat_heads].astype(bf16)          # referents          [N, H]
    tp_rows = flat_h[flat_tails].astype(bf16)         # positive samples   [N, H]
    tq_rows = flat_h[flat_negs].astype(bf16)          # negative samples   [N, H]

    # Attribute / relation ids — gathered in-kernel via one-hot matmuls.
    ids = jnp.stack(
        [attr_flat[flat_heads], attr_flat[flat_tails], attr_flat[flat_negs],
         rel_id.reshape(-1)], axis=-1).astype(jnp.int32)             # [N, 4]

    # ---- tiny resident tables: lane-pad D, fuse re|im, sublane-pad rows ----
    def fuse_reim(w2d):
        re, im = w2d[:, :D], w2d[:, D:]
        if d_pad != D:
            z = jnp.zeros((w2d.shape[0], d_pad - D), w2d.dtype)
            re = jnp.concatenate([re, z], axis=-1)
            im = jnp.concatenate([im, z], axis=-1)
        return jnp.concatenate([re, im], axis=-1)                    # [K, 2*Dp]

    w_er_f = fuse_reim(w_er).astype(bf16)                            # [H, 2Dp]
    w_cr_f = fuse_reim(w_cr).astype(bf16)                            # [H, 2Dp]
    attrib_proj = fuse_reim(attrib_table @ w_ar).astype(bf16)        # [A, 2Dp]
    rel_f = fuse_reim(rel_table).astype(bf16)                        # [R, 2Dp]

    A, R = attrib_proj.shape[0], rel_f.shape[0]
    a_p, r_p = _round_up(A, 8), _round_up(R, 8)
    if a_p != A:
        attrib_proj = jnp.pad(attrib_proj, ((0, a_p - A), (0, 0)))
    if r_p != R:
        rel_f = jnp.pad(rel_f, ((0, r_p - R), (0, 0)))

    # ---- tile choice against an explicit VMEM working-set budget -----------
    n = int(flat_heads.shape[0])

    def working_set(t):
        streams = 2 * (3 * t * H * 2 + t * 4 * 4)              # double-buffered
        tables = 2 * (2 * H + a_p + r_p) * 2 * d_pad * 2       # double-buffered
        # TODO(synk): pipeline_mode=pl.Buffered(1) on the constant-index table
        # specs would halve `tables` (matters on v7x's 64 MiB VMEM).
        return streams + tables + 2 * 8 * 128 * 4

    tile = _round_up(min(max(block_n, 8), max(n, 8)), 8)
    while tile > 8 and working_set(tile) > vmem_budget_bytes:
        tile = _round_up(tile // 2, 8)

    n_rows = max(n, tile)
    if n_rows != n:            # only when N < tile: pads fewer than 8 rows
        pad = n_rows - n
        ids = jnp.pad(ids, ((0, pad), (0, 0)))
        h_rows = jnp.pad(h_rows, ((0, pad), (0, 0)))
        tp_rows = jnp.pad(tp_rows, ((0, pad), (0, 0)))
        tq_rows = jnp.pad(tq_rows, ((0, pad), (0, 0)))

    grid_n = pl.cdiv(n_rows, tile)

    kernel = functools.partial(
        _coref_mrl_kernel, margin=float(margin),
        scale=float(lambda_w) / float(n), n_valid=n, d_pad=d_pad)

    flops = 2 * n_rows * 2 * d_pad * (3 * H + 3 * a_p + r_p)
    bytes_accessed = (ids.size * 4
                      + (h_rows.size + tp_rows.size + tq_rows.size) * 2
                      + (w_er_f.size + w_cr_f.size
                         + attrib_proj.size + rel_f.size) * 2
                      + grid_n * 8 * 128 * 4)
    vmem_limit = min(100 * 1024 * 1024,
                     max(32 * 1024 * 1024,
                         int(1.5 * working_set(tile)) + (4 << 20)))

    parts = pl.pallas_call(
        kernel,
        out_shape=jax.ShapeDtypeStruct((grid_n, 8, 128), jnp.float32),
        grid=(grid_n,),
        in_specs=[
            pl.BlockSpec((tile, 4), lambda i: (i, 0)),          # attr/rel ids
            pl.BlockSpec((tile, H), lambda i: (i, 0)),          # referent rows
            pl.BlockSpec((tile, H), lambda i: (i, 0)),          # positive tails
            pl.BlockSpec((tile, H), lambda i: (i, 0)),          # negative tails
            pl.BlockSpec((H, 2 * d_pad), lambda i: (0, 0)),     # W_er (re|im)
            pl.BlockSpec((H, 2 * d_pad), lambda i: (0, 0)),     # W_cr (re|im)
            pl.BlockSpec((a_p, 2 * d_pad), lambda i: (0, 0)),   # attrib @ W_ar
            pl.BlockSpec((r_p, 2 * d_pad), lambda i: (0, 0)),   # relation table
        ],
        out_specs=pl.BlockSpec((1, 8, 128), lambda i: (i, 0, 0)),  # per-block sums
        compiler_params=pltpu.CompilerParams(
            dimension_semantics=("parallel",),      # no carried accumulator
            vmem_limit_bytes=vmem_limit),
        cost_estimate=pl.CostEstimate(flops=int(flops), transcendentals=0,
                                      bytes_accessed=int(bytes_accessed)),
    )(ids, h_rows, tp_rows, tq_rows, w_er_f, w_cr_f, attrib_proj, rel_f)

    loss = jnp.sum(parts[:, 0, 0])     # partial sums are already * lambda_w / N
    return loss, h_x


def init_params(key, hidden, cdim, num_rel, num_attr):
    """Deterministic synthetic parameters (shapes implied by __init__ models)."""
    k1, k2, k3, k4, k5 = jax.random.split(key, 5)
    scale = 1.0 / jnp.sqrt(hidden)
    return {
        "w_er": jax.random.normal(k1, (hidden, 2 * cdim), jnp.float32) * scale,
        "w_cr": jax.random.normal(k2, (hidden, 2 * cdim), jnp.float32) * scale,
        "w_ar": jax.random.normal(k3, (hidden, 2 * cdim), jnp.float32) * scale,
        "rel_table": jax.random.normal(k4, (num_rel, 2 * cdim), jnp.float32) * 0.1,
        "attrib_table": jax.random.normal(k5, (num_attr, hidden), jnp.float32) * 0.1,
    }


if __name__ == "__main__":
    B, S, H = 2, 8, 32          # batch, sequence, hidden
    T = 4                       # triples per batch element  -> N = B*T = 8
    CDIM = 16                   # complex embedding dim (2*CDIM = 32)
    NUM_REL, NUM_ATTR = 5, 6

    key = jax.random.PRNGKey(0)
    k_hx, k_tr, k_ctx, k_attr, k_param = jax.random.split(key, 5)

    h_x = jax.random.normal(k_hx, (B, S, H), jnp.float32)
    triples = jnp.stack(
        [
            jax.random.randint(jax.random.fold_in(k_tr, 0), (B, T), 0, S),
            jax.random.randint(jax.random.fold_in(k_tr, 1), (B, T), 0, NUM_REL),
            jax.random.randint(jax.random.fold_in(k_tr, 2), (B, T), 0, S),
        ],
        axis=-1,
    ).astype(jnp.int32)                                   # [B, T, 3]
    offsets = jnp.arange(B, dtype=jnp.int32) * S          # [B]
    contexts = jax.random.randint(k_ctx, (B, T), 0, S, jnp.int32)
    attributes = jax.random.randint(k_attr, (B, S), 0, NUM_ATTR, jnp.int32)

    params = init_params(k_param, H, CDIM, NUM_REL, NUM_ATTR)

    loss, h_x_out = coref_mrl_forward(
        h_x, triples, offsets, contexts, attributes, params,
        margin=MARGIN, lambda_w=LAMBDA_W,
    )
    jax.block_until_ready((loss, h_x_out))
    assert h_x_out.shape == (B, S, H)
    assert loss.shape == () and jnp.isfinite(loss)
    print("KERNEL_OK")
</pallas_src>

<mosaic_0001>
module attributes {stable_mosaic.version = 11 : i64} {
  func.func @_coref_mrl_kernel(%arg0: i32, %arg1: memref<8x4xi32, #tpu.memory_space<vmem>>, %arg2: memref<8x32xbf16, #tpu.memory_space<vmem>>, %arg3: memref<8x32xbf16, #tpu.memory_space<vmem>>, %arg4: memref<8x32xbf16, #tpu.memory_space<vmem>>, %arg5: memref<32x256xbf16, #tpu.memory_space<vmem>>, %arg6: memref<32x256xbf16, #tpu.memory_space<vmem>>, %arg7: memref<8x256xbf16, #tpu.memory_space<vmem>>, %arg8: memref<8x256xbf16, #tpu.memory_space<vmem>>, %arg9: memref<1x8x128xf32, #tpu.memory_space<vmem>>) attributes {dimension_semantics = [#tpu.dimension_semantics<parallel>], iteration_bounds = array<i64: 1>, scalar_prefetch = 0 : i64, scratch_operands = 0 : i64, tpu.core_type = #tpu.core_type<tc>, window_params = [{transform_indices = @transform_0, window_bounds = array<i64: 8, 4>}, {transform_indices = @transform_1, window_bounds = array<i64: 8, 32>}, {transform_indices = @transform_2, window_bounds = array<i64: 8, 32>}, {transform_indices = @transform_3, window_bounds = array<i64: 8, 32>}, {pipeline_mode = #tpu.pipeline_mode<synchronous>, transform_indices = @transform_4, window_bounds = array<i64: 32, 256>}, {pipeline_mode = #tpu.pipeline_mode<synchronous>, transform_indices = @transform_5, window_bounds = array<i64: 32, 256>}, {pipeline_mode = #tpu.pipeline_mode<synchronous>, transform_indices = @transform_6, window_bounds = array<i64: 8, 256>}, {pipeline_mode = #tpu.pipeline_mode<synchronous>, transform_indices = @transform_7, window_bounds = array<i64: 8, 256>}, {transform_indices = @transform_8, window_bounds = array<i64: 1, 8, 128>}]} {
    %c0 = arith.constant 0 : index
    %c0_0 = arith.constant 0 : index
    %0 = vector.load %arg1[%c0, %c0_0] : memref<8x4xi32, #tpu.memory_space<vmem>>, vector<8x4xi32>
    %c0_1 = arith.constant 0 : index
    %c0_2 = arith.constant 0 : index
    %1 = vector.load %arg7[%c0_1, %c0_2] : memref<8x256xbf16, #tpu.memory_space<vmem>>, vector<8x256xbf16>
    %c0_3 = arith.constant 0 : index
    %c0_4 = arith.constant 0 : index
    %2 = vector.load %arg8[%c0_3, %c0_4] : memref<8x256xbf16, #tpu.memory_space<vmem>>, vector<8x256xbf16>
    %c0_5 = arith.constant 0 : index
    %c0_6 = arith.constant 0 : index
    %3 = vector.load %arg2[%c0_5, %c0_6] : memref<8x32xbf16, #tpu.memory_space<vmem>>, vector<8x32xbf16>
    %c0_7 = arith.constant 0 : index
    %c0_8 = arith.constant 0 : index
    %4 = vector.load %arg5[%c0_7, %c0_8] : memref<32x256xbf16, #tpu.memory_space<vmem>>, vector<32x256xbf16>
    %cst = arith.constant dense<0.000000e+00> : vector<8x256xf32>
    %5 = tpu.matmul %3, %4, %cst {dimension_numbers = #tpu.dot_dimension_numbers<[1], [0], [0], [1], [0, 0, 1, 1], [], []>} : vector<8x32xbf16>, vector<32x256xbf16>, vector<8x256xf32> -> vector<8x256xf32>
    %6 = tpu.iota {dimensions = array<i32: 1>} : vector<8x8xi32>
    %7 = vector.extract_strided_slice %0 {offsets = [0, 0], sizes = [8, 1], strides = [1, 1]} : vector<8x4xi32> to vector<8x1xi32>
    %8 = vector.broadcast %7 : vector<8x1xi32> to vector<8x8xi32>
    %9 = arith.cmpi eq, %8, %6 : vector<8x8xi32>
    %10 = arith.extui %9 : vector<8x8xi1> to vector<8x8xi32>
    %11 = arith.sitofp %10 : vector<8x8xi32> to vector<8x8xf32>
    %12 = arith.truncf %11 : vector<8x8xf32> to vector<8x8xbf16>
    %cst_9 = arith.constant dense<0.000000e+00> : vector<8x256xf32>
    %13 = tpu.matmul %12, %1, %cst_9 {dimension_numbers = #tpu.dot_dimension_numbers<[1], [0], [0], [1], [0, 0, 1, 1], [], []>} : vector<8x8xbf16>, vector<8x256xbf16>, vector<8x256xf32> -> vector<8x256xf32>
    %14 = arith.addf %5, %13 : vector<8x256xf32>
    %c0_10 = arith.constant 0 : index
    %c0_11 = arith.constant 0 : index
    %15 = vector.load %arg3[%c0_10, %c0_11] : memref<8x32xbf16, #tpu.memory_space<vmem>>, vector<8x32xbf16>
    %c0_12 = arith.constant 0 : index
    %c0_13 = arith.constant 0 : index
    %16 = vector.load %arg6[%c0_12, %c0_13] : memref<32x256xbf16, #tpu.memory_space<vmem>>, vector<32x256xbf16>
    %cst_14 = arith.constant dense<0.000000e+00> : vector<8x256xf32>
    %17 = tpu.matmul %15, %16, %cst_14 {dimension_numbers = #tpu.dot_dimension_numbers<[1], [0], [0], [1], [0, 0, 1, 1], [], []>} : vector<8x32xbf16>, vector<32x256xbf16>, vector<8x256xf32> -> vector<8x256xf32>
    %18 = tpu.iota {dimensions = array<i32: 1>} : vector<8x8xi32>
    %19 = vector.extract_strided_slice %0 {offsets = [0, 1], sizes = [8, 1], strides = [1, 1]} : vector<8x4xi32> to vector<8x1xi32>
    %20 = vector.broadcast %19 : vector<8x1xi32> to vector<8x8xi32>
    %21 = arith.cmpi eq, %20, %18 : vector<8x8xi32>
    %22 = arith.extui %21 : vector<8x8xi1> to vector<8x8xi32>
    %23 = arith.sitofp %22 : vector<8x8xi32> to vector<8x8xf32>
    %24 = arith.truncf %23 : vector<8x8xf32> to vector<8x8xbf16>
    %cst_15 = arith.constant dense<0.000000e+00> : vector<8x256xf32>
    %25 = tpu.matmul %24, %1, %cst_15 {dimension_numbers = #tpu.dot_dimension_numbers<[1], [0], [0], [1], [0, 0, 1, 1], [], []>} : vector<8x8xbf16>, vector<8x256xbf16>, vector<8x256xf32> -> vector<8x256xf32>
    %26 = arith.addf %17, %25 : vector<8x256xf32>
    %c0_16 = arith.constant 0 : index
    %c0_17 = arith.constant 0 : index
    %27 = vector.load %arg4[%c0_16, %c0_17] : memref<8x32xbf16, #tpu.memory_space<vmem>>, vector<8x32xbf16>
    %c0_18 = arith.constant 0 : index
    %c0_19 = arith.constant 0 : index
    %28 = vector.load %arg6[%c0_18, %c0_19] : memref<32x256xbf16, #tpu.memory_space<vmem>>, vector<32x256xbf16>
    %cst_20 = arith.constant dense<0.000000e+00> : vector<8x256xf32>
    %29 = tpu.matmul %27, %28, %cst_20 {dimension_numbers = #tpu.dot_dimension_numbers<[1], [0], [0], [1], [0, 0, 1, 1], [], []>} : vector<8x32xbf16>, vector<32x256xbf16>, vector<8x256xf32> -> vector<8x256xf32>
    %30 = tpu.iota {dimensions = array<i32: 1>} : vector<8x8xi32>
    %31 = vector.extract_strided_slice %0 {offsets = [0, 2], sizes = [8, 1], strides = [1, 1]} : vector<8x4xi32> to vector<8x1xi32>
    %32 = vector.broadcast %31 : vector<8x1xi32> to vector<8x8xi32>
    %33 = arith.cmpi eq, %32, %30 : vector<8x8xi32>
    %34 = arith.extui %33 : vector<8x8xi1> to vector<8x8xi32>
    %35 = arith.sitofp %34 : vector<8x8xi32> to vector<8x8xf32>
    %36 = arith.truncf %35 : vector<8x8xf32> to vector<8x8xbf16>
    %cst_21 = arith.constant dense<0.000000e+00> : vector<8x256xf32>
    %37 = tpu.matmul %36, %1, %cst_21 {dimension_numbers = #tpu.dot_dimension_numbers<[1], [0], [0], [1], [0, 0, 1, 1], [], []>} : vector<8x8xbf16>, vector<8x256xbf16>, vector<8x256xf32> -> vector<8x256xf32>
    %38 = arith.addf %29, %37 : vector<8x256xf32>
    %39 = tpu.iota {dimensions = array<i32: 1>} : vector<8x8xi32>
    %40 = vector.extract_strided_slice %0 {offsets = [0, 3], sizes = [8, 1], strides = [1, 1]} : vector<8x4xi32> to vector<8x1xi32>
    %41 = vector.broadcast %40 : vector<8x1xi32> to vector<8x8xi32>
    %42 = arith.cmpi eq, %41, %39 : vector<8x8xi32>
    %43 = arith.extui %42 : vector<8x8xi1> to vector<8x8xi32>
    %44 = arith.sitofp %43 : vector<8x8xi32> to vector<8x8xf32>
    %45 = arith.truncf %44 : vector<8x8xf32> to vector<8x8xbf16>
    %cst_22 = arith.constant dense<0.000000e+00> : vector<8x256xf32>
    %46 = tpu.matmul %45, %2, %cst_22 {dimension_numbers = #tpu.dot_dimension_numbers<[1], [0], [0], [1], [0, 0, 1, 1], [], []>} : vector<8x8xbf16>, vector<8x256xbf16>, vector<8x256xf32> -> vector<8x256xf32>
    %47 = vector.extract_strided_slice %14 {offsets = [0, 0], sizes = [8, 128], strides = [1, 1]} : vector<8x256xf32> to vector<8x128xf32>
    %48 = vector.extract_strided_slice %14 {offsets = [0, 128], sizes = [8, 128], strides = [1, 1]} : vector<8x256xf32> to vector<8x128xf32>
    %49 = vector.extract_strided_slice %46 {offsets = [0, 0], sizes = [8, 128], strides = [1, 1]} : vector<8x256xf32> to vector<8x128xf32>
    %50 = vector.extract_strided_slice %46 {offsets = [0, 128], sizes = [8, 128], strides = [1, 1]} : vector<8x256xf32> to vector<8x128xf32>
    %51 = arith.mulf %47, %49 : vector<8x128xf32>
    %52 = arith.mulf %48, %50 : vector<8x128xf32>
    %53 = arith.subf %51, %52 : vector<8x128xf32>
    %54 = arith.mulf %48, %49 : vector<8x128xf32>
    %55 = arith.mulf %47, %50 : vector<8x128xf32>
    %56 = arith.addf %54, %55 : vector<8x128xf32>
    %57 = vector.extract_strided_slice %26 {offsets = [0, 0], sizes = [8, 128], strides = [1, 1]} : vector<8x256xf32> to vector<8x128xf32>
    %58 = arith.mulf %57, %53 : vector<8x128xf32>
    %59 = vector.extract_strided_slice %26 {offsets = [0, 128], sizes = [8, 128], strides = [1, 1]} : vector<8x256xf32> to vector<8x128xf32>
    %60 = arith.mulf %59, %56 : vector<8x128xf32>
    %61 = arith.addf %58, %60 : vector<8x128xf32>
    %cst_23 = arith.constant dense<0.000000e+00> : vector<8xf32>
    %62 = vector.multi_reduction <add>, %61, %cst_23 [1] : vector<8x128xf32> to vector<8xf32>
    %63 = vector.shape_cast %62 : vector<8xf32> to vector<8x1xf32>
    %64 = vector.extract_strided_slice %38 {offsets = [0, 0], sizes = [8, 128], strides = [1, 1]} : vector<8x256xf32> to vector<8x128xf32>
    %65 = arith.mulf %64, %53 : vector<8x128xf32>
    %66 = vector.extract_strided_slice %38 {offsets = [0, 128], sizes = [8, 128], strides = [1, 1]} : vector<8x256xf32> to vector<8x128xf32>
    %67 = arith.mulf %66, %56 : vector<8x128xf32>
    %68 = arith.addf %65, %67 : vector<8x128xf32>
    %cst_24 = arith.constant dense<0.000000e+00> : vector<8xf32>
    %69 = vector.multi_reduction <add>, %68, %cst_24 [1] : vector<8x128xf32> to vector<8xf32>
    %70 = vector.shape_cast %69 : vector<8xf32> to vector<8x1xf32>
    %71 = tpu.iota {dimensions = array<i32: 0>} : vector<8x1xi32>
    %c8_i32 = arith.constant 8 : i32
    %72 = arith.muli %arg0, %c8_i32 : i32
    %73 = vector.broadcast %72 : i32 to vector<8x1xi32>
    %74 = arith.addi %71, %73 : vector<8x1xi32>
    %cst_25 = arith.constant 1.000000e+00 : f32
    %75 = vector.broadcast %cst_25 : f32 to vector<8x1xf32>
    %76 = arith.addf %75, %70 : vector<8x1xf32>
    %77 = arith.subf %76, %63 : vector<8x1xf32>
    %cst_26 = arith.constant 0.000000e+00 : f32
    %78 = vector.broadcast %cst_26 : f32 to vector<8x1xf32>
    %79 = arith.maximumf %77, %78 : vector<8x1xf32>
    %c8_i32_27 = arith.constant 8 : i32
    %80 = vector.broadcast %c8_i32_27 : i32 to vector<8x1xi32>
    %81 = arith.cmpi slt, %74, %80 : vector<8x1xi32>
    %cst_28 = arith.constant 0.000000e+00 : f32
    %82 = vector.broadcast %cst_28 : f32 to vector<8x1xf32>
    %83 = arith.select %81, %79, %82 : vector<8x1xi1>, vector<8x1xf32>
    %84 = vector.shape_cast %83 : vector<8x1xf32> to vector<1x8x1xf32>
    %cst_29 = arith.constant dense<0.000000e+00> : vector<1xf32>
    %85 = vector.multi_reduction <add>, %84, %cst_29 [1, 2] : vector<1x8x1xf32> to vector<1xf32>
    %86 = vector.shape_cast %85 : vector<1xf32> to vector<1x1x1xf32>
    %87 = vector.extract %86[0, 0, 0] : f32 from vector<1x1x1xf32>
    %cst_30 = arith.constant 6.250000e-02 : f32
    %88 = arith.mulf %87, %cst_30 : f32
    %89 = vector.broadcast %88 : f32 to vector<1x8x128xf32>
    %c0_31 = arith.constant 0 : index
    %c0_32 = arith.constant 0 : index
    %c0_33 = arith.constant 0 : index
    %90 = vector.load %arg9[%c0_31, %c0_32, %c0_33] : memref<1x8x128xf32, #tpu.memory_space<vmem>>, vector<1x8x128xf32>
    tpu.vector_store %arg9[%c0_31, %c0_32, %c0_33], %89 {strides = array<i32>} : memref<1x8x128xf32, #tpu.memory_space<vmem>>, vector<1x8x128xf32>,
    return
  }
  func.func @transform_0(%arg0: i32) -> (i32, i32) {
    %c0_i32 = arith.constant 0 : i32
    %c0_i32_0 = arith.constant 0 : i32
    return %arg0, %c0_i32 : i32, i32
  }
  func.func @transform_1(%arg0: i32) -> (i32, i32) {
    %c0_i32 = arith.constant 0 : i32
    %c0_i32_0 = arith.constant 0 : i32
    return %arg0, %c0_i32 : i32, i32
  }
  func.func @transform_2(%arg0: i32) -> (i32, i32) {
    %c0_i32 = arith.constant 0 : i32
    %c0_i32_0 = arith.constant 0 : i32
    return %arg0, %c0_i32 : i32, i32
  }
  func.func @transform_3(%arg0: i32) -> (i32, i32) {
    %c0_i32 = arith.constant 0 : i32
    %c0_i32_0 = arith.constant 0 : i32
    return %arg0, %c0_i32 : i32, i32
  }
  func.func @transform_4(%arg0: i32) -> (i32, i32) {
    %c0_i32 = arith.constant 0 : i32
    %c0_i32_0 = arith.constant 0 : i32
    %c0_i32_1 = arith.constant 0 : i32
    return %c0_i32, %c0_i32_0 : i32, i32
  }
  func.func @transform_5(%arg0: i32) -> (i32, i32) {
    %c0_i32 = arith.constant 0 : i32
    %c0_i32_0 = arith.constant 0 : i32
    %c0_i32_1 = arith.constant 0 : i32
    return %c0_i32, %c0_i32_0 : i32, i32
  }
  func.func @transform_6(%arg0: i32) -> (i32, i32) {
    %c0_i32 = arith.constant 0 : i32
    %c0_i32_0 = arith.constant 0 : i32
    %c0_i32_1 = arith.constant 0 : i32
    return %c0_i32, %c0_i32_0 : i32, i32
  }
  func.func @transform_7(%arg0: i32) -> (i32, i32) {
    %c0_i32 = arith.constant 0 : i32
    %c0_i32_0 = arith.constant 0 : i32
    %c0_i32_1 = arith.constant 0 : i32
    return %c0_i32, %c0_i32_0 : i32, i32
  }
  func.func @transform_8(%arg0: i32) -> (i32, i32, i32) {
    %c0_i32 = arith.constant 0 : i32
    %c0_i32_0 = arith.constant 0 : i32
    %c0_i32_1 = arith.constant 0 : i32
    return %arg0, %c0_i32, %c0_i32_0 : i32, i32, i32
  }
}

</mosaic_0001>

<bundles_post_ra>
// kernel: tpu_custom_call.1
= control target key start
LH: loop header
LB: loop body
LE: loop exit
PB: predicated region body
PF: predicated region fallthrough
CT: control target
= control target key end

     0   :  { %13 = vsyncpa [#allocation3], 0  ;;  %s870_s0 = inlined_call_operand.vmem [shape: s32[8,4], index: 0, kind: input, shape index: {}]   ;;  %s871_s1 = inlined_call_operand.hbm [shape: bf16[8,32], index: 1, kind: input, shape index: {}]   ;;  %s872_s2 = inlined_call_operand.hbm [shape: bf16[8,32], index: 2, kind: input, shape index: {}]   ;;  %s873_s3 = inlined_call_operand.hbm [shape: bf16[8,32], index: 3, kind: input, shape index: {}]   ;;  %s874_s4 = inlined_call_operand.hbm [shape: bf16[32,256], index: 4, kind: input, shape index: {}]   ;;  %s875_s5 = inlined_call_operand.hbm [shape: bf16[32,256], index: 5, kind: input, shape index: {}]   ;;  %s876_s6 = inlined_call_operand.vmem [shape: bf16[8,256], index: 6, kind: input, shape index: {}]   ;;  %s877_s7 = inlined_call_operand.vmem [shape: bf16[8,256], index: 7, kind: input, shape index: {}]   ;;  %s878_s8 = inlined_call_operand.hbm [shape: f32[1,8,128], index: 8, kind: output, shape index: {}]  }
   0x1   :  { %14 = vsyncpa [#allocation6], 0 }
   0x2   :  { %15 = vsyncpa [#allocation9], 0 }
   0x3   :  { %16 = vsyncpa [#allocation4], 0  ;;  %s758_s27 = smov [#allocation5]   ;;  %s759_s29 = smov [#allocation8]  }
   0x4   :  { %s35_s28 = sshll.u32 %s758_s27, 4  ;;  %s54_s30 = sshll.u32 %s759_s29, 4  ;;  %s36_s28 = int_to_ptr.vmem [resolvable:$true] %s35_s28  ;;  %s55_s30 = int_to_ptr.vmem [resolvable:$true] %s54_s30 }
   0x5   :  { %s638_s9 = scalar_lea.vmem %s36_s28, 64  ;;  %p643_p1 = scmp.lt.s32.totalorder %s36_s28, %s36_s28 }
   0x6   :  { %p639_p0 = scmp.ne.s32.totalorder %s36_s28, %s638_s9  ;;  %p644_p2 = scmp.lt.s32.totalorder %s638_s9, %s638_s9 }
   0x8   :  { %p645_p3 = por %p644_p2, %p643_p1 }
   0xa   :  { %p646_p4 = pnand %p645_p3, %p639_p0 }
   0xc   :  { %649 = shalt.err (!%p646_p4)
}
   0xd   :  { %38 = dma.hbm_to_vmem [thread:$0]  %s872_s2, 64, %s36_s28, [#allocation6]  }
   0xe   :  { %s658_s12 = scalar_lea.vmem %s55_s30, 512  ;;  %p663_p6 = scmp.lt.s32.totalorder %s55_s30, %s55_s30 }
   0xf   :  { %p659_p5 = scmp.ne.s32.totalorder %s55_s30, %s658_s12  ;;  %p664_p7 = scmp.lt.s32.totalorder %s658_s12, %s658_s12 }
  0x11   :  { %p665_p8 = por %p664_p7, %p663_p6 }
  0x13   :  { %p666_p9 = pnand %p665_p8, %p659_p5 }
  0x15   :  { %669 = shalt.err (!%p666_p9)
}
  0x16   :  { %s760_s13 = smov 128   ;;  %s761_s14 = smov 8  }
  0x17   :  { %60 = dma.hbm_to_vmem [thread:$0]  %s874_s4, 512, %s55_s30, [#allocation9], %s760_s13, %s760_s13, %s761_s14  }
  0x18   :  { %s762_s17 = smov [#allocation2]   ;;  %s763_s19 = smov [#allocation7]  }
  0x19   :  { %s25_s18 = sshll.u32 %s762_s17, 4  ;;  %s45_s2 = sshll.u32 %s763_s19, 4  ;;  %s26_s18 = int_to_ptr.vmem [resolvable:$true] %s25_s18  ;;  %s46_s2 = int_to_ptr.vmem [resolvable:$true] %s45_s2 }
  0x1a   :  { %s678_s20 = scalar_lea.vmem %s26_s18, 64  ;;  %p683_p11 = scmp.lt.s32.totalorder %s26_s18, %s26_s18 }
  0x1b   :  { %p679_p10 = scmp.ne.s32.totalorder %s26_s18, %s678_s20  ;;  %p684_p12 = scmp.lt.s32.totalorder %s678_s20, %s678_s20 }
  0x1d   :  { %p685_p13 = por %p684_p12, %p683_p11 }
  0x1f   :  { %p686_p0 = pnand %p685_p13, %p679_p10 }
  0x21   :  { %689 = shalt.err (!%p686_p0)
}
  0x22   :  { %28 = dma.hbm_to_vmem [thread:$0]  %s871_s1, 64, %s26_s18, [#allocation3]  }
  0x23   :  { %s698_s23 = scalar_lea.vmem %s46_s2, 64  ;;  %p703_p2 = scmp.lt.s32.totalorder %s46_s2, %s46_s2 }
  0x24   :  { %p699_p1 = scmp.ne.s32.totalorder %s46_s2, %s698_s23  ;;  %p704_p3 = scmp.lt.s32.totalorder %s698_s23, %s698_s23 }
  0x26   :  { %p705_p4 = por %p704_p3, %p703_p2 }
  0x28   :  { %p706_p5 = pnand %p705_p4, %p699_p1 }
  0x2a   :  { %709 = shalt.err (!%p706_p5)
}
  0x2b   :  { %48 = dma.hbm_to_vmem [thread:$0]  %s873_s3, 64, %s46_s2, [#allocation6]  }
  0x2c   :  { %s764_s25 = smov [#allocation10]  }
  0x2d   :  { %s66_s26 = sshll.u32 %s764_s25, 4  ;;  %s67_s26 = int_to_ptr.vmem [resolvable:$true] %s66_s26 }
  0x2e   :  { %s718_s27 = scalar_lea.vmem %s67_s26, 512  ;;  %p723_p7 = scmp.lt.s32.totalorder %s67_s26, %s67_s26 }
  0x2f   :  { %p719_p6 = scmp.ne.s32.totalorder %s67_s26, %s718_s27  ;;  %p724_p8 = scmp.lt.s32.totalorder %s718_s27, %s718_s27 }
  0x31   :  { %p725_p9 = por %p724_p8, %p723_p7 }
  0x33   :  { %p726_p10 = pnand %p725_p9, %p719_p6 }
  0x35   :  { %729 = shalt.err (!%p726_p10)
}
  0x36   :  { %72 = dma.hbm_to_vmem [thread:$0]  %s875_s5, 512, %s67_s26, [#allocation9], %s760_s13, %s760_s13, %s761_s14  }
  0x37   :  { %750 = dma.done.wait [#allocation3], 64  }
  0x38   :  { %751 = vsyncadd [#allocation3], 4294967232 }
  0x39   :  { %752 = dma.done.wait [#allocation6], 128  }
  0x3a   :  { %753 = vsyncadd [#allocation6], 4294967168 }
  0x3b   :  { %754 = dma.done.wait [#allocation9], 1024  }
  0x3c   :  { %755 = vsyncadd [#allocation9], 4294966272  ;;  %v765_v0 = vmov 0   ;;  %v766_v1 = vmov 2   ;;  %v93_v2 = vld [vmem:[%s870_s0] sm:$0xff]  ;;  %vm119_vm0 = vcmask 1043456   ;;  %v101_v20 = vlaneseq }
  0x3d   :  { %609 = vset.pattern.permute.xlu0 %v765_v0  ;;  %611 = vset.pattern.permute.xlu1 %v766_v1  ;;  %v614_v3 = vld [vmem:[#allocation8 + $0x14] ss:$8 sps:$4 sm:$0xff]   ;;  %v616_v4 = vld [vmem:[#allocation8 + $0x10] ss:$8 sps:$4 sm:$0xff]   ;;  %v619_v8 = vld [vmem:[#allocation8 + $0x4] ss:$8 sps:$4 sm:$0xff]  }
  0x3e   :  { %158 = vmatprep.mubr.bf16.mxu0 %v765_v0  ;;  %223 = vmatprep.mubr.bf16.mxu1 %v765_v0  ;;  %v94_v5 = vld [vmem:[%s876_s6] sm:$0xff]  ;;  %v621_v10 = vld [vmem:[#allocation8] ss:$8 sps:$4 sm:$0xff]   ;;  %v767_v11 = vmov 1   ;;  %v768_v12 = vmov 3   ;;  %vm187_vm1 = vcmask 261120  }
  0x3f   :  { %104 = vperm.xlu0 %609, %v93_v2   ;;  %354 = vperm.xlu1 %611, %v93_v2   ;;  %v569_v6 = vcombine.high %v94_v5, %v94_v5  ;;  %v568_v7 = vcombine.low %v94_v5, %v94_v5  ;;  %v624_v13 = vld [vmem:[#allocation10 + $0x14] ss:$8 sps:$4 sm:$0xff]   ;;  %v622_v15 = vld [vmem:[#allocation10 + $0x10] ss:$8 sps:$4 sm:$0xff]   ;;  %v627_v16 = vld [vmem:[#allocation10 + $0x4] ss:$8 sps:$4 sm:$0xff]  }
  0x40   :  { %203 = vmatprep.subr.bf16.mxu1 %v614_v3  ;;  %v96_v14 = vld [vmem:[#allocation2] sm:$0xf]  ;;  %v625_v17 = vld [vmem:[#allocation10] ss:$8 sps:$4 sm:$0xff]   ;;  %v232_v18 = vld [vmem:[#allocation5] sm:$0xf] }
  0x41   :  { %204 = vmatpush1.bf16.msra.mxu1 %v616_v4  ;;  %570 = vmatprep.subr.msk.bf16.mxu0 %vm119_vm0, %v569_v6  ;;  %v121_v9 = vsel %vm119_vm0, %v568_v7, 0  ;;  %v352_v19 = vld [vmem:[#allocation7] sm:$0xf]  ;;  %v102_v21 = vand.u32 127, %v101_v20  ;;  %v769_v23 = vmov 0.0   ;;  %vm115_vm3 = vcmask 64512  }
  0x42   :  { %141 = vmatpush1.bf16.msra.mxu0 %v121_v9  ;;  %205 = vmatprep.subr.bf16.mxu1 %v619_v8  ;;  %v95_v29 = vld [vmem:[%s877_s7] sm:$0xff]  ;;  %vm536_vm7 = vcmask 7168   ;;  %s770_s7 = smov [#allocation11]  }
  0x43   :  { %610 = vset.pattern.permute.xlu0 %v767_v11  ;;  %612 = vset.pattern.permute.xlu1 %v768_v12  ;;  %v591_v31 = vcombine.high %v95_v29, %v95_v29  ;;  %v590_v33 = vcombine.low %v95_v29, %v95_v29  ;;  %s556_s9 = sshll.u32 %s770_s7, 4  ;;  %s557_s9 = int_to_ptr.vmem [resolvable:$true] %s556_s9 }
  0x44   :  { %238 = vperm.xlu0 %610, %v93_v2   ;;  %449 = vperm.xlu1 %612, %v93_v2   ;;  %s730_s12 = scalar_lea.vmem %s557_s9, 128  ;;  %p735_p12 = scmp.lt.s32.totalorder %s557_s9, %s557_s9 }
  0x45   :  { %206 = vmatpush1.bf16.msra.mxu1 %v621_v10  ;;  %578 = vmatprep.subr.msk.bf16.mxu0 %vm119_vm0, %v569_v6  ;;  %v464_v36 = vsel %vm119_vm0, %v590_v33, 0  ;;  %p731_p11 = scmp.ne.s32.totalorder %s557_s9, %s730_s12  ;;  %p736_p13 = scmp.lt.s32.totalorder %s730_s12, %s730_s12 }
  0x46   :  { %323 = vmatprep.subr.bf16.mxu1 %v624_v13 }
  0x47   :  { %p737_p0 = por %p736_p13, %p735_p12 }
  0x48   :  { %613 = vset.pattern.permute.xlu0 %v768_v12  ;;  %576 = vmatmul.mubr.msk.bf16.vlgmr.msra.gmra.mxu1 %vm187_vm1, %v96_v14 }
  0x49   :  { %324 = vmatpush1.bf16.msra.mxu1 %v622_v15  ;;  %343 = vmatprep.mubr.bf16.mxu1 %v765_v0  ;;  %p738_p1 = pnand %p737_p0, %p731_p11 }
  0x4a   :  { %325 = vmatprep.subr.bf16.mxu1 %v627_v16 }
  0x4d   :  { %326 = vmatpush1.bf16.msra.mxu1 %v625_v17 }
  0x4e   :  { %419 = vmatprep.subr.bf16.mxu1 %v624_v13 }
  0x50   :  { %584 = vmatmul.mubr.msk.bf16.vlgmr.msra.gmra.mxu1 %vm187_vm1, %v232_v18 }
  0x51   :  { %420 = vmatpush1.bf16.msra.mxu1 %v622_v15  ;;  %439 = vmatprep.mubr.bf16.mxu1 %v765_v0 }
  0x52   :  { %421 = vmatprep.subr.bf16.mxu1 %v627_v16 }
  0x55   :  { %422 = vmatpush1.bf16.msra.mxu1 %v625_v17 }
  0x58   :  { %588 = vmatmul.mubr.msk.bf16.vlgmr.msra.gmra.mxu1 %vm187_vm1, %v352_v19 }
  0xba   :  { %v105_v22 = vpop.permute.xlu0 %104  ;;  %v355_v28 = vpop.permute.xlu1 %354 }
  0xbb   :  { %vm106_vm2 = vcmp.eq.s32.totalorder %v105_v22, %v102_v21  ;;  %vm356_vm5 = vcmp.eq.s32.totalorder %v355_v28, %v102_v21 }
  0xbc   :  { %v567_v24 = vsel %vm106_vm2, 1.0, %v769_v23  ;;  %v585_v32 = vsel %vm356_vm5, 1.0, %v769_v23 }
  0xbd   :  { %v109_v25 = vpack.c.bf16 %v567_v24, %v567_v24  ;;  %v359_v35 = vpack.c.bf16 %v585_v32, %v585_v32 }
  0xbf   :  { %571 = vmatmul.mubr.msk.bf16.vlgmr.msra.gmra.mxu0 %vm115_vm3, %v109_v25  ;;  %v239_v26 = vpop.permute.xlu0 %238  ;;  %v450_v34 = vpop.permute.xlu1 %449 }
  0xc0   :  { %262 = vmatpush1.bf16.msra.mxu0 %v121_v9  ;;  %vm240_vm4 = vcmp.eq.s32.totalorder %v239_v26, %v102_v21  ;;  %279 = vmatprep.mubr.bf16.mxu0 %v765_v0  ;;  %vm451_vm6 = vcmp.eq.s32.totalorder %v450_v34, %v102_v21 }
  0xc1   :  { %v577_v27 = vsel %vm240_vm4, 1.0, %v769_v23  ;;  %586 = vmatprep.subr.msk.bf16.mxu0 %vm119_vm0, %v569_v6  ;;  %v589_v37 = vsel %vm451_vm6, 1.0, %v769_v23 }
  0xc2   :  { %v243_v30 = vpack.c.bf16 %v577_v27, %v577_v27  ;;  %v454_v38 = vpack.c.bf16 %v589_v37, %v589_v37 }
  0xc7   :  { %579 = vmatmul.mubr.msk.bf16.vlgmr.msra.gmra.mxu0 %vm115_vm3, %v243_v30 }
  0xc8   :  { %378 = vmatpush1.bf16.msra.mxu0 %v121_v9  ;;  %395 = vmatprep.mubr.bf16.mxu0 %v765_v0 }
  0xc9   :  { %592 = vmatprep.subr.msk.bf16.mxu0 %vm119_vm0, %v591_v31 }
  0xcf   :  { %587 = vmatmul.mubr.msk.bf16.vlgmr.msra.gmra.mxu0 %vm115_vm3, %v359_v35 }
  0xd0   :  { %484 = vmatpush1.bf16.msra.mxu0 %v464_v36  ;;  %501 = vmatprep.mubr.bf16.mxu0 %v765_v0 }
  0xd7   :  { %593 = vmatmul.mubr.msk.bf16.vlgmr.msra.gmra.mxu0 %vm115_vm3, %v454_v38 }
 0x108   :  { %v225_v39 = vpop.f32.mrf.mxu1 }
 0x10a   :  { %v227_v40 = vpop.f32.mrf.mxu1 }
 0x10c   :  { %v229_v41 = vpop.f32.mrf.mxu1 }
 0x10e   :  { %v230_v42 = vpop.f32.mrf.mxu1 }
 0x110   :  { %v345_v43 = vpop.f32.mrf.mxu1 }
 0x112   :  { %v347_v44 = vpop.f32.mrf.mxu1 }
 0x114   :  { %v349_v45 = vpop.f32.mrf.mxu1 }
 0x116   :  { %v350_v46 = vpop.f32.mrf.mxu1 }
 0x118   :  { %v441_v47 = vpop.f32.mrf.mxu1 }
 0x11a   :  { %v443_v48 = vpop.f32.mrf.mxu1 }
 0x11c   :  { %v445_v49 = vpop.f32.mrf.mxu1 }
 0x11e   :  { %v446_v50 = vpop.f32.mrf.mxu1 }
 0x17f   :  { %v160_v51 = vpop.f32.mrf.mxu0 }
 0x180   :  { %v226_v0 = vadd.f32 %v225_v39, %v160_v51 }
 0x181   :  { %v162_v52 = vpop.f32.mrf.mxu0 }
 0x182   :  { %v228_v1 = vadd.f32 %v227_v40, %v162_v52 }
 0x183   :  { %v164_v53 = vpop.f32.mrf.mxu0 }
 0x185   :  { %v165_v54 = vpop.f32.mrf.mxu0 }
 0x187   :  { %v281_v55 = vpop.f32.mrf.mxu0 }
 0x188   :  { %v346_v7 = vadd.f32 %v345_v43, %v281_v55 }
 0x189   :  { %v283_v56 = vpop.f32.mrf.mxu0 }
 0x18a   :  { %v348_v8 = vadd.f32 %v347_v44, %v283_v56 }
 0x18b   :  { %v285_v57 = vpop.f32.mrf.mxu0 }
 0x18d   :  { %v286_v58 = vpop.f32.mrf.mxu0 }
 0x18f   :  { %v397_v59 = vpop.f32.mrf.mxu0 }
 0x190   :  { %v442_v10 = vadd.f32 %v441_v47, %v397_v59 }
 0x191   :  { %v399_v60 = vpop.f32.mrf.mxu0 }
 0x192   :  { %v444_v11 = vadd.f32 %v443_v48, %v399_v60 }
 0x193   :  { %v401_v61 = vpop.f32.mrf.mxu0 }
 0x195   :  { %v402_v62 = vpop.f32.mrf.mxu0 }
 0x197   :  { %v503_v63 = vpop.f32.mrf.mxu0 }
 0x198   :  { %v510_v3 = vmul.f32 %v503_v63, %v226_v0  ;;  %v513_v4 = vmul.f32 %v503_v63, %v228_v1 }
 0x199   :  { %v505_v2 = vpop.f32.mrf.mxu0 }
 0x19a   :  { %v511_v5 = vmul.f32 %v505_v2, %v228_v1  ;;  %v514_v6 = vmul.f32 %v505_v2, %v226_v0 }
 0x19b   :  { %v507_v9 = vpop.f32.mrf.mxu0 }
 0x19c   :  { %v512_v12 = vsub.f32 %v510_v3, %v511_v5  ;;  %v515_v13 = vadd.f32 %v514_v6, %v513_v4 }
 0x19d   :  { %v508_v14 = vpop.f32.mrf.mxu0 }
 0x19e   :  { %v521_v15 = vmul.f32 %v512_v12, %v442_v10  ;;  %v522_v16 = vmul.f32 %v515_v13, %v444_v11  ;;  %v516_v17 = vmul.f32 %v512_v12, %v346_v7  ;;  %v517_v18 = vmul.f32 %v515_v13, %v348_v8 }
 0x1a0   :  { %v523_v19 = vadd.f32 %v522_v16, %v521_v15  ;;  %v518_v20 = vadd.f32 %v517_v18, %v516_v17 }
 0x1a2   :  { %524 = vadd.xlane.f32.xlu1 %v523_v19  ;;  %519 = vadd.xlane.f32.xlu0 %v518_v20 }
 0x22b   :  { %v525_v21 = vpop.xlane.xlu1 %524  ;;  %v520_v23 = vpop.xlane.xlu0 %519 }
 0x22c   :  { %v531_v22 = vadd.f32 1.0, %v525_v21 }
 0x22e   :  { %v532_v24 = vsub.f32 %v531_v22, %v520_v23 }
 0x230   :  { %v533_v25 = vmax.f32 %v532_v24, 0.0 }
 0x232   :  { %v537_v26 = vsel %vm536_vm7, %v533_v25, 0.0 }
 0x233   :  { %538 = vadd.xlane.f32.xlu0 %v537_v26 }
 0x2bc   :  { %v539_v27 = vpop.xlane.xlu0 %538 }
 0x2bd   :  { %v540_v28 = vrot.slane %v539_v27, 4 }
 0x2bf   :  { %v541_v29 = vadd.f32 %v540_v28, %v539_v27 }
 0x2c1   :  { %v542_v30 = vrot.slane %v541_v29, 2 }
 0x2c3   :  { %v543_v31 = vadd.f32 %v542_v30, %v541_v29 }
 0x2c5   :  { %v544_v32 = vrot.slane %v543_v31, 1 }
 0x2c7   :  { %v545_v33 = vadd.f32 %v544_v32, %v543_v31 }
 0x2c9   :  { %594 = vpush %v545_v33 }
 0x2fa   :  { %s595_s10 = spop %594 }
 0x2fb   :  { %s547_s11 = smul.f32 0.0625, %s595_s10 }
 0x2fd   :  { %v548_v34 = vstv %s547_s11 }
 0x2fe   :  { %549 = vst [vmem:[#allocation11] sm:$0xff] %v548_v34 }
 0x2ff   :  { %741 = shalt.err (!%p738_p1)
}
 0x300   :  { %559 = dma.vmem_to_hbm [thread:$0]  %s557_s9, 128, %s878_s8, [#allocation4]  }
 0x301   :  { %756 = dma.done.wait [#allocation4], 128  }
 0x302   :  { %757 = vsyncadd [#allocation4], 4294967168 }
 0x303   :  { %563 = vsyncpa [#allocation3], 1 }
 0x304   :  { %564 = vsyncpa [#allocation6], 1 }
 0x305   :  { %565 = vsyncpa [#allocation9], 1 }
 0x306   :  { %566 = vsyncpa [#allocation4], 1 }

</bundles_post_ra>
